<compile_context>
chip_gen: v7x
topology: tpu7x:2x2x1
jax: 0.10.0
libtpu: 0.0.40
codegen_flags: <defaults>
</compile_context>

<pallas_src>
import functools

import jax
import jax.numpy as jnp
from jax.experimental import pallas as pl
from jax.experimental.pallas import tpu as pltpu

SUBLANE = 8  # f32 sublane alignment for the second-to-last block dim


def _round_up(x, m):
    return ((x + m - 1) // m) * m


def _cdiv(a, b):
    return -(-a // b)


def _fused_mlp_kernel(x_ref, *rest, n_layers):
    """rest = (w0_ref, ..., w_{n-1}_ref, o_ref); all tiles resident in VMEM."""
    w_refs = rest[:n_layers]
    o_ref = rest[n_layers]
    h = x_ref[...]  # no explicit upcast: MXU accumulates in f32 below
    for li in range(n_layers):
        h = jnp.dot(h, w_refs[li][...], preferred_element_type=jnp.float32)
        if li < n_layers - 1:
            h = jnp.maximum(h, 0.0)  # ReLU on hidden layers only
    o_ref[...] = h.astype(o_ref.dtype)


def prepare_weights(weights_torch_layout):
    """One-time prep (off the forward hot path): transpose PyTorch (out, in)
    weights to (in, out).  No padding -- the kernel uses the true shapes."""
    return [jnp.transpose(w) for w in weights_torch_layout]


def autofc_forward(x, prepped_weights, size, *, block_batch=4096):
    """Fused AutoFC forward (bias=False, no jump layers).
    `prepped_weights` come from prepare_weights()."""
    n_layers = len(prepped_weights)
    in0, out_last = size[0], size[-1]
    assert prepped_weights[0].shape[0] == in0
    assert prepped_weights[-1].shape[1] == out_last

    h = x.reshape(-1, in0)
    batch = h.shape[0]
    batch_8 = _round_up(batch, SUBLANE)

    itemsize = jnp.dtype(x.dtype).itemsize
    weight_bytes = sum(int(w.size) * jnp.dtype(w.dtype).itemsize
                       for w in prepped_weights)

    # --- batch-tile sizing ---------------------------------------------------
    # Per-row VMEM footprint: double-buffered x & y tiles plus the f32
    # intermediates for the hidden activations.
    bytes_per_row = 2 * itemsize * (in0 + out_last) + 4 * sum(size[1:])
    vmem_budget = 24 << 20  # stay well under v7x's 64 MiB per TensorCore
    max_tb = max(SUBLANE,
                 ((vmem_budget - 2 * weight_bytes) // bytes_per_row)
                 // SUBLANE * SUBLANE)
    eff_block = min(_round_up(block_batch, SUBLANE), max_tb)

    n_tiles = _cdiv(batch_8, eff_block)
    if batch_8 > SUBLANE:
        # Keep the parallel grid length even (>=2) so both v7x TensorCores get
        # work; with a single sublane-group of rows it would only add
        # pure-padding traffic, so skip it there.
        n_tiles = max(2, n_tiles + (n_tiles % 2))
    tb = _round_up(_cdiv(batch_8, n_tiles), SUBLANE)
    batch_p = n_tiles * tb

    # Row-only padding (features are NOT padded).  Valid because bias=False and
    # the padded rows never feed back into real rows.
    if batch_p != batch:
        h = jnp.pad(h, ((0, batch_p - batch), (0, 0)))

    # --- specs -----------------------------------------------------------------
    in_specs = [pl.BlockSpec((tb, in0), lambda i: (i, 0))]
    for w in prepped_weights:
        # Full-array block + constant index_map -> weight fetched once and kept
        # resident in VMEM across the whole batch grid.
        in_specs.append(pl.BlockSpec(w.shape, lambda i: (0, 0)))
    out_specs = pl.BlockSpec((tb, out_last), lambda i: (i, 0))

    flops = 2 * batch_p * sum(int(w.shape[0]) * int(w.shape[1])
                              for w in prepped_weights)
    bytes_accessed = itemsize * batch_p * (in0 + out_last) + weight_bytes

    vmem_limit = int(2 * (bytes_per_row * tb + weight_bytes)) + (1 << 20)
    vmem_limit = min(max(vmem_limit, 8 << 20), 32 << 20)

    kernel = functools.partial(_fused_mlp_kernel, n_layers=n_layers)
    y = pl.pallas_call(
        kernel,
        out_shape=jax.ShapeDtypeStruct((batch_p, out_last), x.dtype),
        grid=(n_tiles,),
        in_specs=in_specs,
        out_specs=out_specs,
        compiler_params=pltpu.CompilerParams(
            dimension_semantics=("parallel",),  # batch tiles shard across TCs
            vmem_limit_bytes=vmem_limit,
        ),
        cost_estimate=pl.CostEstimate(
            flops=flops, transcendentals=0, bytes_accessed=bytes_accessed),
    )(h, *prepped_weights)

    # Drop the (row-only) padding; no lane slice needed anymore.
    return y[:batch] if batch_p != batch else y
    # TODO(synk): jump (skip) layers are only created via create_jumper(); the
    # default forward never instantiates them, so they are not implemented.


def init_weights(key, size, dtype=jnp.float32):
    """Deterministic PyTorch-style init: U(-1/sqrt(fan_in), 1/sqrt(fan_in)),
    stored in PyTorch Linear (out_features, in_features) layout."""
    weights = []
    for i in range(len(size) - 1):
        key, sub = jax.random.split(key)
        fan_in, fan_out = size[i], size[i + 1]
        bound = 1.0 / jnp.sqrt(jnp.asarray(fan_in, dtype))
        w = jax.random.uniform(
            sub, (fan_out, fan_in), dtype=dtype, minval=-bound, maxval=bound
        )
        weights.append(w)
    return weights


def reference_forward(x, weights, size):
    """Pure-JAX reference of AutoFC.forward (bias=False, no jumpers)."""
    h = x.reshape(-1, size[0])
    h = jnp.maximum(h @ weights[0].T, 0.0)
    for idx in range(1, len(weights) - 1):
        h = jnp.maximum(h @ weights[idx].T, 0.0)
    return h @ weights[-1].T


if __name__ == "__main__":
    # perceptrons = [n_input, n_hidden_1, n_hidden_2, n_output]
    size = [32, 64, 48, 16]
    key = jax.random.PRNGKey(0)
    key, xkey = jax.random.split(key)

    # x: (2, 4, 8) -> view(-1, 32) gives a batch of 2 rows of 32 features
    x = jax.random.normal(xkey, (2, 4, 8), dtype=jnp.float32)
    weights = init_weights(key, size)
    prepped = prepare_weights(weights)   # one-time: transpose to (in, out)

    y = autofc_forward(x, prepped, size)
    y = jax.block_until_ready(y)
    y_ref = reference_forward(x, weights, size)
    assert y.shape == (2, size[-1]), y.shape
    assert jnp.allclose(y, y_ref, atol=1e-5, rtol=1e-5), "mismatch vs reference"

    # Exercise a multi-tile batch grid (64 rows, forced 16-row tiles -> grid=(4,)).
    key, xkey2 = jax.random.split(key)
    x2 = jax.random.normal(xkey2, (64, 4, 8), dtype=jnp.float32)
    y2 = jax.block_until_ready(autofc_forward(x2, prepped, size, block_batch=16))
    y2_ref = reference_forward(x2, weights, size)
    assert y2.shape == (64, size[-1]), y2.shape
    assert jnp.allclose(y2, y2_ref, atol=1e-5, rtol=1e-5), "mismatch (tiled batch)"

    print("KERNEL_OK")
</pallas_src>

<mosaic_0001>
module attributes {stable_mosaic.version = 11 : i64} {
  func.func @_fused_mlp_kernel(%arg0: i32, %arg1: memref<8x32xf32, #tpu.memory_space<vmem>>, %arg2: memref<32x64xf32, #tpu.memory_space<vmem>>, %arg3: memref<64x48xf32, #tpu.memory_space<vmem>>, %arg4: memref<48x16xf32, #tpu.memory_space<vmem>>, %arg5: memref<8x16xf32, #tpu.memory_space<vmem>>) attributes {dimension_semantics = [#tpu.dimension_semantics<parallel>], iteration_bounds = array<i64: 1>, scalar_prefetch = 0 : i64, scratch_operands = 0 : i64, tpu.core_type = #tpu.core_type<tc>, window_params = [{transform_indices = @transform_0, window_bounds = array<i64: 8, 32>}, {pipeline_mode = #tpu.pipeline_mode<synchronous>, transform_indices = @transform_1, window_bounds = array<i64: 32, 64>}, {pipeline_mode = #tpu.pipeline_mode<synchronous>, transform_indices = @transform_2, window_bounds = array<i64: 64, 48>}, {pipeline_mode = #tpu.pipeline_mode<synchronous>, transform_indices = @transform_3, window_bounds = array<i64: 48, 16>}, {transform_indices = @transform_4, window_bounds = array<i64: 8, 16>}]} {
    %c0 = arith.constant 0 : index
    %c0_0 = arith.constant 0 : index
    %0 = vector.load %arg1[%c0, %c0_0] : memref<8x32xf32, #tpu.memory_space<vmem>>, vector<8x32xf32>
    %c0_1 = arith.constant 0 : index
    %c0_2 = arith.constant 0 : index
    %1 = vector.load %arg2[%c0_1, %c0_2] : memref<32x64xf32, #tpu.memory_space<vmem>>, vector<32x64xf32>
    %cst = arith.constant dense<0.000000e+00> : vector<8x64xf32>
    %2 = tpu.matmul %0, %1, %cst {dimension_numbers = #tpu.dot_dimension_numbers<[1], [0], [0], [1], [0, 0, 1, 1], [], []>} : vector<8x32xf32>, vector<32x64xf32>, vector<8x64xf32> -> vector<8x64xf32>
    %cst_3 = arith.constant 0.000000e+00 : f32
    %3 = vector.broadcast %cst_3 : f32 to vector<8x64xf32>
    %4 = arith.maximumf %2, %3 : vector<8x64xf32>
    %c0_4 = arith.constant 0 : index
    %c0_5 = arith.constant 0 : index
    %5 = vector.load %arg3[%c0_4, %c0_5] : memref<64x48xf32, #tpu.memory_space<vmem>>, vector<64x48xf32>
    %cst_6 = arith.constant dense<0.000000e+00> : vector<8x48xf32>
    %6 = tpu.matmul %4, %5, %cst_6 {dimension_numbers = #tpu.dot_dimension_numbers<[1], [0], [0], [1], [0, 0, 1, 1], [], []>} : vector<8x64xf32>, vector<64x48xf32>, vector<8x48xf32> -> vector<8x48xf32>
    %cst_7 = arith.constant 0.000000e+00 : f32
    %7 = vector.broadcast %cst_7 : f32 to vector<8x48xf32>
    %8 = arith.maximumf %6, %7 : vector<8x48xf32>
    %c0_8 = arith.constant 0 : index
    %c0_9 = arith.constant 0 : index
    %9 = vector.load %arg4[%c0_8, %c0_9] : memref<48x16xf32, #tpu.memory_space<vmem>>, vector<48x16xf32>
    %cst_10 = arith.constant dense<0.000000e+00> : vector<8x16xf32>
    %10 = tpu.matmul %8, %9, %cst_10 {dimension_numbers = #tpu.dot_dimension_numbers<[1], [0], [0], [1], [0, 0, 1, 1], [], []>} : vector<8x48xf32>, vector<48x16xf32>, vector<8x16xf32> -> vector<8x16xf32>
    %c0_11 = arith.constant 0 : index
    %c0_12 = arith.constant 0 : index
    %11 = vector.load %arg5[%c0_11, %c0_12] : memref<8x16xf32, #tpu.memory_space<vmem>>, vector<8x16xf32>
    tpu.vector_store %arg5[%c0_11, %c0_12], %10 {strides = array<i32>} : memref<8x16xf32, #tpu.memory_space<vmem>>, vector<8x16xf32>,
    return
  }
  func.func @transform_0(%arg0: i32) -> (i32, i32) {
    %c0_i32 = arith.constant 0 : i32
    %c0_i32_0 = arith.constant 0 : i32
    return %arg0, %c0_i32 : i32, i32
  }
  func.func @transform_1(%arg0: i32) -> (i32, i32) {
    %c0_i32 = arith.constant 0 : i32
    %c0_i32_0 = arith.constant 0 : i32
    %c0_i32_1 = arith.constant 0 : i32
    return %c0_i32, %c0_i32_0 : i32, i32
  }
  func.func @transform_2(%arg0: i32) -> (i32, i32) {
    %c0_i32 = arith.constant 0 : i32
    %c0_i32_0 = arith.constant 0 : i32
    %c0_i32_1 = arith.constant 0 : i32
    return %c0_i32, %c0_i32_0 : i32, i32
  }
  func.func @transform_3(%arg0: i32) -> (i32, i32) {
    %c0_i32 = arith.constant 0 : i32
    %c0_i32_0 = arith.constant 0 : i32
    %c0_i32_1 = arith.constant 0 : i32
    return %c0_i32, %c0_i32_0 : i32, i32
  }
  func.func @transform_4(%arg0: i32) -> (i32, i32) {
    %c0_i32 = arith.constant 0 : i32
    %c0_i32_0 = arith.constant 0 : i32
    return %arg0, %c0_i32 : i32, i32
  }
}

</mosaic_0001>

<bundles_post_ra>
// kernel: tpu_custom_call.1
= control target key start
LH: loop header
LB: loop body
LE: loop exit
PB: predicated region body
PF: predicated region fallthrough
CT: control target
= control target key end

     0   :  { %v401_v3 = vmov 0.0|0.0   ;;  %vm402_vm0 = vmmov 0   ;;  %v403_v6 = vmov 0.0   ;;  %s502_s0 = inlined_call_operand.vmem [shape: f32[8,32], index: 0, kind: input, shape index: {}]   ;;  %s503_s1 = inlined_call_operand.vmem [shape: f32[32,64], index: 1, kind: input, shape index: {}]   ;;  %s504_s2 = inlined_call_operand.vmem [shape: f32[64,48], index: 2, kind: input, shape index: {}]   ;;  %s505_s3 = inlined_call_operand.vmem [shape: f32[48,16], index: 3, kind: input, shape index: {}]   ;;  %s506_s4 = inlined_call_operand.hbm [shape: f32[8,16], index: 4, kind: output, shape index: {}]  }
   0x1   :  { %v19_v0 = vld [vmem:[%s503_s1] sm:$0xff]  ;;  %v20_v1 = vld [vmem:[%s503_s1 + $0x8] sm:$0xff]  ;;  %v21_v2 = vld [vmem:[%s503_s1 + $0x10] sm:$0xff]  ;;  %346 = vmatprep.subr.bf16.mxu0 %v401_v3  ;;  %309 = vmatprep.mubr.msk.f32.mxu0 %vm402_vm0, %v403_v6 }
   0x2   :  { %v347_v4 = vpack.c.bf16 %v20_v1, %v19_v0  ;;  %v22_v5 = vld [vmem:[%s503_s1 + $0x18] sm:$0xff]  ;;  %v98_v7 = vld [vmem:[%s504_s2] sm:$0xff]  ;;  %352 = vmatprep.subr.bf16.mxu1 %v401_v3  ;;  %v99_v8 = vld [vmem:[%s504_s2 + $0x8] sm:$0xff]  ;;  %328 = vmatprep.mubr.msk.f32.mxu1 %vm402_vm0, %v403_v6 }
   0x3   :  { %v100_v9 = vld [vmem:[%s504_s2 + $0x10] sm:$0xff]  ;;  %v101_v10 = vld [vmem:[%s504_s2 + $0x18] sm:$0xff]  ;;  %v350_v11 = vpack.c.bf16 %v22_v5, %v21_v2  ;;  %v353_v12 = vpack.c.bf16 %v99_v8, %v98_v7 }
   0x4   :  { %348 = vmatpush3.bf16.msra.mxu0 %v347_v4 }
   0x5   :  { %9 = vsyncpa [#allocation3], 0  ;;  %349 = vmatprep.subr.bf16.mxu0 %v401_v3  ;;  %354 = vmatpush3.bf16.msra.mxu1 %v353_v12  ;;  %v356_v13 = vpack.c.bf16 %v101_v10, %v100_v9  ;;  %v102_v14 = vld [vmem:[%s504_s2 + $0x20] sm:$0xff]  ;;  %v103_v15 = vld [vmem:[%s504_s2 + $0x28] sm:$0xff]  ;;  %vm23_vm1 = vcmask 261120   ;;  %vm106_vm2 = vcmask 523264  }
   0x6   :  { %355 = vmatprep.subr.bf16.mxu1 %v401_v3  ;;  %v18_v16 = vld [vmem:[%s502_s0] sm:$0xff]  ;;  %v359_v17 = vpack.c.bf16 %v103_v15, %v102_v14  ;;  %v104_v18 = vld [vmem:[%s504_s2 + $0x30] sm:$0xff]  ;;  %v105_v19 = vld [vmem:[%s504_s2 + $0x38] sm:$0xff]  ;;  %vm187_vm3 = vcmask 392192   ;;  %s404_s24 = smov [#allocation2]   ;;  %vm261_vm4 = vcmask 130048  }
   0x7   :  { %v362_v20 = vpack.c.bf16 %v105_v19, %v104_v18  ;;  %v181_v21 = vld [vmem:[%s505_s3] sm:$0xff]  ;;  %v182_v22 = vld [vmem:[%s505_s3 + $0x8] sm:$0xff]  ;;  %v183_v23 = vld [vmem:[%s505_s3 + $0x10] sm:$0xff]  ;;  %s269_s25 = sshll.u32 %s404_s24, 4  ;;  %s270_s25 = int_to_ptr.vmem [resolvable:$true] %s269_s25 }
   0x8   :  { %351 = vmatpush3.bf16.msra.mxu0 %v350_v11  ;;  %v365_v24 = vpack.c.bf16 %v182_v22, %v181_v21  ;;  %v184_v25 = vld [vmem:[%s505_s3 + $0x18] sm:$0xff]  ;;  %v185_v30 = vld [vmem:[%s505_s3 + $0x20] sm:$0xff]  ;;  %v186_v31 = vld [vmem:[%s505_s3 + $0x28] sm:$0xff]  ;;  %s377_s26 = scalar_lea.vmem %s270_s25, 128  ;;  %p382_p1 = scmp.lt.s32.totalorder %s270_s25, %s270_s25 }
   0x9   :  { %364 = vmatprep.subr.bf16.mxu0 %v401_v3  ;;  %357 = vmatpush3.bf16.msra.mxu1 %v356_v13  ;;  %v368_v26 = vpack.c.bf16 %v184_v25, %v183_v23  ;;  %v371_v32 = vpack.c.bf16 %v186_v31, %v185_v30  ;;  %p378_p0 = scmp.ne.s32.totalorder %s270_s25, %s377_s26  ;;  %p383_p2 = scmp.lt.s32.totalorder %s377_s26, %s377_s26 }
   0xa   :  { %358 = vmatprep.subr.bf16.mxu1 %v401_v3 }
   0xb   :  { %310 = vmatmul.mubr.msk.f32.vlgmr.msra.gmra.mrb[0].mxu0 %vm23_vm1, %v18_v16  ;;  %p384_p3 = por %p383_p2, %p382_p1 }
   0xc   :  { %343 = vmatprep.mubr.msk.f32.mxu0 %vm402_vm0, %v403_v6  ;;  %366 = vmatpush3.bf16.msra.mxu0 %v365_v24 }
   0xd   :  { %360 = vmatpush3.bf16.msra.mxu1 %v359_v17  ;;  %367 = vmatprep.subr.bf16.mxu0 %v401_v3  ;;  %p385_p4 = pnand %p384_p3, %p378_p0 }
   0xe   :  { %361 = vmatprep.subr.bf16.mxu1 %v401_v3 }
  0x10   :  { %369 = vmatpush3.bf16.msra.mxu0 %v368_v26 }
  0x11   :  { %363 = vmatpush3.bf16.msra.mxu1 %v362_v20  ;;  %370 = vmatprep.subr.bf16.mxu0 %v401_v3 }
  0x14   :  { %372 = vmatpush3.bf16.msra.mxu0 %v371_v32 }
  0xde   :  { %v93_v27 = vpop.f32.mrb[0].mxu0 }
  0xdf   :  { %v97_v28 = vmax.f32 %v93_v27, 0.0  ;;  %v311_v29 = vpop.f32.mrb[1].mxu0 }
  0xe1   :  { %329 = vmatmul.mubr.msk.f32.vlgmr.msra.gmra.mrb[0].mxu1 %vm106_vm2, %v97_v28 }
 0x1b4   :  { %v176_v33 = vpop.f32.mrb[0].mxu1 }
 0x1b5   :  { %v180_v34 = vmax.f32 %v176_v33, 0.0  ;;  %v330_v35 = vpop.f32.mrb[1].mxu1 }
 0x1b7   :  { %344 = vmatmul.mubr.msk.f32.vlgmr.msra.gmra.mrb[2].mxu0 %vm187_vm3, %v180_v34 }
 0x28a   :  { %v257_v36 = vpop.f32.mrb[2].mxu0 }
 0x28b   :  { %262 = vst.msk [vmem:[#allocation2] sm:$0xff] %vm261_vm4, %v257_v36  ;;  %v345_v37 = vpop.f32.mrb[3].mxu0 }
 0x28c   :  { %388 = shalt.err (!%p385_p4)
}
 0x28d   :  { %s389_s28 = scalar_lea.hbm %s506_s4, 128 }
 0x28e   :  { %p390_p5 = scmp.ne.s32.totalorder %s506_s4, %s389_s28  ;;  %p393_p6 = scmp.lt.u32.totalorder %s389_s28, %s506_s4 }
 0x290   :  { %p395_p7 = pnand %p393_p6, %p390_p5 }
 0x292   :  { %398 = shalt.err (!%p395_p7)
}
 0x293   :  { %272 = dma.vmem_to_hbm [thread:$0]  %s270_s25, 128, %s506_s4, [#allocation3]  }
 0x294   :  { %399 = dma.done.wait [#allocation3], 128  }
 0x295   :  { %400 = vsyncadd [#allocation3], 4294967168 }
 0x296   :  { %276 = vsyncpa [#allocation3], 1 }

</bundles_post_ra>
